<compile_context>
chip_gen: v5e
topology: v5e:2x2
jax: 0.10.0
libtpu: 0.0.40
codegen_flags: <defaults>
</compile_context>

<pallas_src>
import jax
import jax.numpy as jnp
from jax.experimental import pallas as pl
from jax.experimental.pallas import tpu as pltpu


# ----------------------------------------------------------------------------
# VMEM / tiling policy helpers
# ----------------------------------------------------------------------------

def _vmem_phys_bytes():
    """Physical VMEM per TensorCore; conservative fallback fits every gen."""
    try:
        info = pltpu.get_tpu_info()
        phys = int(getattr(info, "vmem_capacity_bytes", 0))
        if phys > 0:
            return phys
    except Exception:
        pass
    return 64 * 1024 * 1024  # v7x-sized fallback (v5e/v6e have 128 MiB)


def _round_tile(tb, n_rows):
    """Clamp a batch tile: multiple of 8 unless it covers the whole axis."""
    tb = min(tb, n_rows)
    if tb < n_rows:
        tb = max(8, (tb // 8) * 8)
        tb = min(tb, n_rows)
    return tb


def _pick_batch_tile(n_rows, per_row_bytes, *, min_steps=4):
    """Largest batch tile under a generation-aware VMEM budget that still
    leaves >= min_steps grid steps (pipelining + v7x megacore)."""
    phys = _vmem_phys_bytes()
    budget = min(int(phys * 0.40), 48 * 1024 * 1024)
    tb_budget = max(8, budget // max(per_row_bytes, 1))
    if n_rows >= min_steps * 8:
        tb = min(tb_budget, pl.cdiv(n_rows, min_steps))
    else:
        tb = n_rows
    return _round_tile(tb, n_rows), phys


def _vmem_limit_bytes(phys, block_bytes):
    """Explicit scoped-VMEM limit: covers the blocks + scratch, <= 70% phys."""
    return int(min(phys * 0.70, max(32 * 1024 * 1024, 2 * block_bytes + (8 << 20))))


# ----------------------------------------------------------------------------
# Packed bf16 kernel (num_mfs == 2): no transpose, half writeback
# ----------------------------------------------------------------------------

def _f32_to_bf16_bits(v):
    """Round-to-nearest-even f32 -> bf16 bit pattern, returned in the low 16
    bits of a uint32 (values here are finite and in (0, 1], no NaN handling)."""
    bits = pltpu.bitcast(v, jnp.uint32)
    lsb = (bits >> 16) & jnp.uint32(1)
    return (bits + jnp.uint32(0x7FFF) + lsb) >> 16


def _fuzzy_packed_kernel(x_ref, c_ref, n_ref, o_ref):
    """One batch tile, both membership functions packed along lanes.

    x_ref: (TB, De) f32   inputs (lane-folded feature dim)
    c_ref: (2,  De) f32   centers, one row per membership function
    n_ref: (2,  De) f32   precomputed -1 / (2*sigma^2 + 1e-6)
    o_ref: (TB, De) u32   packed bf16 pair: mf0 in low 16 bits, mf1 in high
    """
    x = x_ref[...]
    d0 = x - c_ref[0:1, :]
    d1 = x - c_ref[1:2, :]
    m0 = jnp.exp(d0 * d0 * n_ref[0:1, :])      # (TB, De) f32
    m1 = jnp.exp(d1 * d1 * n_ref[1:2, :])
    b0 = _f32_to_bf16_bits(m0)
    b1 = _f32_to_bf16_bits(m1)
    o_ref[...] = b0 | (b1 << 16)


def fuzzy_layer_packed_bf16(x, centers, sigmas, *, block_b=None):
    """Default fast path (num_mfs == 2). Returns bf16 membership (B, D, 2)
    in the PyTorch layout, produced without any post-kernel transpose."""
    B, D = x.shape
    D2, M = centers.shape
    assert D == D2 and M == 2 and sigmas.shape == (D, M)

    # Hoisted parameter math (tiny (D, 2) arrays, computed once in XLA).
    neg_inv = -1.0 / (2.0 * sigmas * sigmas + 1e-6)

    # Lane folding: pack k batch rows onto the lane axis when D < 128.
    k = 1
    if D < 128:
        k = max(1, 128 // D)
        while k > 1 and B % k != 0:
            k //= 2
    De, Bf = k * D, B // k
    xf = x.reshape(Bf, De)                                        # free, row-major
    c_rows = jnp.stack([jnp.tile(centers[:, m], k) for m in range(2)])   # (2, De)
    n_rows = jnp.stack([jnp.tile(neg_inv[:, m], k) for m in range(2)])   # (2, De)

    per_row = De * (2 * 4 + 2 * 4)   # double-buffered f32 x tile + u32 out tile
    if block_b is None:
        block_b, phys = _pick_batch_tile(Bf, per_row)
    else:
        block_b = _round_tile(int(block_b), Bf)
        phys = _vmem_phys_bytes()
    grid = (pl.cdiv(Bf, block_b),)

    cost = pl.CostEstimate(
        flops=10 * B * D * M,
        transcendentals=B * D * M,
        bytes_accessed=B * D * 4 + B * D * 4 + 4 * De * 4)

    packed = pl.pallas_call(
        _fuzzy_packed_kernel,
        out_shape=jax.ShapeDtypeStruct((Bf, De), jnp.uint32),
        grid=grid,
        in_specs=[
            pl.BlockSpec((block_b, De), lambda i: (i, 0)),   # x tile
            pl.BlockSpec((2, De), lambda i: (0, 0)),         # centers (resident)
            pl.BlockSpec((2, De), lambda i: (0, 0)),         # -1/(2s^2+eps) (resident)
        ],
        out_specs=pl.BlockSpec((block_b, De), lambda i: (i, 0)),
        compiler_params=pltpu.CompilerParams(
            dimension_semantics=("parallel",),
            vmem_limit_bytes=_vmem_limit_bytes(phys, block_b * per_row)),
        cost_estimate=cost,
    )(xf, c_rows, n_rows)

    # (Bf, De) u32 -> (B, D) u32 -> (B, D, 2) bf16: pure reinterpretation
    # (low 16 bits = mf 0), no transpose, no extra HBM pass in the kernel.
    return jax.lax.bitcast_convert_type(packed.reshape(B, D), jnp.bfloat16)


# ----------------------------------------------------------------------------
# Exact-dtype / general-M kernel: native lane-dense (M, B, D) layout
# ----------------------------------------------------------------------------

def _fuzzy_mbd_kernel(x_ref, c_ref, n_ref, o_ref):
    """x_ref: (TB, D); c_ref, n_ref: (M, D); o_ref: (M, TB, D)."""
    x = x_ref[...]
    c = c_ref[...]
    n = n_ref[...]
    diff = x[None, :, :] - c[:, None, :]                 # (M, TB, D)
    o_ref[...] = jnp.exp(diff * diff * n[:, None, :]).astype(o_ref.dtype)


def fuzzy_layer_mbd(x, centers, sigmas, *, out_dtype=jnp.float32, block_b=None):
    """Native-layout entry point: returns membership as (M, B, D) (lane-dense).
    Consumers that can take this layout should use it directly (no transpose)."""
    B, D = x.shape
    D2, M = centers.shape
    assert D == D2 and sigmas.shape == (D, M)
    out_dtype = jnp.dtype(out_dtype)

    c_t = centers.T                                        # (M, D)
    neg_inv_t = (-1.0 / (2.0 * sigmas * sigmas + 1e-6)).T  # (M, D), hoisted

    per_row = D * (2 * M * out_dtype.itemsize + 2 * 4)
    if block_b is None:
        block_b, phys = _pick_batch_tile(B, per_row)
    else:
        block_b = _round_tile(int(block_b), B)
        phys = _vmem_phys_bytes()
    grid = (pl.cdiv(B, block_b),)

    cost = pl.CostEstimate(
        flops=4 * M * B * D,
        transcendentals=M * B * D,
        bytes_accessed=B * D * 4 + M * B * D * out_dtype.itemsize + 2 * M * D * 4)

    return pl.pallas_call(
        _fuzzy_mbd_kernel,
        out_shape=jax.ShapeDtypeStruct((M, B, D), out_dtype),
        grid=grid,
        in_specs=[
            pl.BlockSpec((block_b, D), lambda i: (i, 0)),
            pl.BlockSpec((M, D), lambda i: (0, 0)),
            pl.BlockSpec((M, D), lambda i: (0, 0)),
        ],
        out_specs=pl.BlockSpec((M, block_b, D), lambda i: (0, i, 0)),
        compiler_params=pltpu.CompilerParams(
            dimension_semantics=("parallel",),
            vmem_limit_bytes=_vmem_limit_bytes(phys, block_b * per_row)),
        cost_estimate=cost,
    )(x, c_t, neg_inv_t)


# ----------------------------------------------------------------------------
# Public wrapper (PyTorch FuzzyLayer.forward semantics)
# ----------------------------------------------------------------------------

def fuzzy_layer_ref(x, centers, sigmas):
    """Pure-JAX reference mirroring the PyTorch forward exactly."""
    return jnp.exp(-(x[:, :, None] - centers) ** 2 / (2.0 * sigmas ** 2 + 1e-6))


def fuzzy_layer(x, centers, sigmas, *, out_dtype=jnp.bfloat16, block_b=None,
                force_pallas=False, min_pallas_elems=64 * 1024):
    """FuzzyLayer.forward: (B, D) x (D, M) params -> (B, D, M) membership.

    Default out_dtype is bf16 (compute stays f32; only the store is bf16),
    which halves the dominant HBM writeback.  Pass out_dtype=jnp.float32 for
    the exact path.
    """
    B, D = x.shape
    D2, M = centers.shape
    assert D == D2 and sigmas.shape == (D, M)
    out_dtype = jnp.dtype(out_dtype)

    if not force_pallas and B * D * M < min_pallas_elems:
        # Tiny problem: a pallas_call is pure launch overhead here.
        return fuzzy_layer_ref(x, centers, sigmas).astype(out_dtype)

    if M == 2 and out_dtype == jnp.dtype(jnp.bfloat16):
        return fuzzy_layer_packed_bf16(x, centers, sigmas, block_b=block_b)

    # TODO(synk): exact-dtype / general-M requests still pay one extra HBM pass
    # for the (M, B, D) -> (B, D, M) layout fixup; consumers should prefer the
    # native-layout fuzzy_layer_mbd or the packed bf16 default above.
    mbd = fuzzy_layer_mbd(x, centers, sigmas, out_dtype=out_dtype, block_b=block_b)
    return jnp.transpose(mbd, (1, 2, 0))


# ----------------------------------------------------------------------------
# Demo / self-test
# ----------------------------------------------------------------------------

if __name__ == "__main__":
    key = jax.random.PRNGKey(0)
    k_x, k_c, k_s = jax.random.split(key, 3)

    # --- Small shape matching the PyTorch module (input_dim=16, num_mfs=2) ---
    B, D, M = 8, 16, 2
    centers = jax.random.uniform(k_c, (D, M), dtype=jnp.float32)   # torch.rand-like
    sigmas = jax.random.uniform(k_s, (D, M), dtype=jnp.float32)
    x = jax.random.normal(k_x, (B, D), dtype=jnp.float32)
    ref = fuzzy_layer_ref(x, centers, sigmas)

    # Default fast path: packed bf16 membership in PyTorch (B, D, M) layout.
    out = jax.block_until_ready(fuzzy_layer(x, centers, sigmas, force_pallas=True))
    assert out.shape == (B, D, M) and out.dtype == jnp.bfloat16
    assert jnp.allclose(out.astype(jnp.float32), ref, atol=1e-2, rtol=1e-2)

    # Exact f32 path (native lane-dense kernel + layout fixup).
    out32 = jax.block_until_ready(
        fuzzy_layer(x, centers, sigmas, out_dtype=jnp.float32, force_pallas=True))
    assert out32.shape == (B, D, M) and out32.dtype == jnp.float32
    assert jnp.allclose(out32, ref, atol=1e-6, rtol=1e-6)

    # --- Tiled path: multi-step batch grid (pipelining + megacore split) ---
    B2, D2, M2 = 512, 256, 2
    k_x2, k_c2, k_s2 = jax.random.split(jax.random.PRNGKey(1), 3)
    centers2 = jax.random.uniform(k_c2, (D2, M2), dtype=jnp.float32)
    sigmas2 = jax.random.uniform(k_s2, (D2, M2), dtype=jnp.float32)
    x2 = jax.random.normal(k_x2, (B2, D2), dtype=jnp.float32)
    ref2 = fuzzy_layer_ref(x2, centers2, sigmas2)

    out2 = jax.block_until_ready(fuzzy_layer(x2, centers2, sigmas2, force_pallas=True))
    assert out2.shape == (B2, D2, M2) and out2.dtype == jnp.bfloat16
    assert jnp.allclose(out2.astype(jnp.float32), ref2, atol=1e-2, rtol=1e-2)

    print("KERNEL_OK")
</pallas_src>

<mosaic_0001>
module attributes {stable_mosaic.version = 11 : i64} {
  func.func @_fuzzy_packed_kernel(%arg0: i32, %arg1: memref<1x128xf32, #tpu.memory_space<vmem>>, %arg2: memref<2x128xf32, #tpu.memory_space<vmem>>, %arg3: memref<2x128xf32, #tpu.memory_space<vmem>>, %arg4: memref<1x128xi32, #tpu.memory_space<vmem>>) attributes {dimension_semantics = [#tpu.dimension_semantics<parallel>], iteration_bounds = array<i64: 1>, scalar_prefetch = 0 : i64, scratch_operands = 0 : i64, tpu.core_type = #tpu.core_type<tc>, window_params = [{transform_indices = @transform_0, window_bounds = array<i64: 1, 128>}, {pipeline_mode = #tpu.pipeline_mode<synchronous>, transform_indices = @transform_1, window_bounds = array<i64: 2, 128>}, {pipeline_mode = #tpu.pipeline_mode<synchronous>, transform_indices = @transform_2, window_bounds = array<i64: 2, 128>}, {transform_indices = @transform_3, window_bounds = array<i64: 1, 128>}]} {
    %c0 = arith.constant 0 : index
    %c0_0 = arith.constant 0 : index
    %0 = vector.load %arg1[%c0, %c0_0] : memref<1x128xf32, #tpu.memory_space<vmem>>, vector<1x128xf32>
    %c0_1 = arith.constant 0 : index
    %c0_2 = arith.constant 0 : index
    %1 = vector.load %arg2[%c0_1, %c0_2] : memref<2x128xf32, #tpu.memory_space<vmem>>, vector<1x128xf32>
    %2 = arith.subf %0, %1 : vector<1x128xf32>
    %c1 = arith.constant 1 : index
    %c0_3 = arith.constant 0 : index
    %3 = vector.load %arg2[%c1, %c0_3] : memref<2x128xf32, #tpu.memory_space<vmem>>, vector<1x128xf32>
    %4 = arith.subf %0, %3 : vector<1x128xf32>
    %5 = arith.mulf %2, %2 : vector<1x128xf32>
    %c0_4 = arith.constant 0 : index
    %c0_5 = arith.constant 0 : index
    %6 = vector.load %arg3[%c0_4, %c0_5] : memref<2x128xf32, #tpu.memory_space<vmem>>, vector<1x128xf32>
    %7 = arith.mulf %5, %6 : vector<1x128xf32>
    %8 = math.exp %7 : vector<1x128xf32>
    %9 = arith.mulf %4, %4 : vector<1x128xf32>
    %c1_6 = arith.constant 1 : index
    %c0_7 = arith.constant 0 : index
    %10 = vector.load %arg3[%c1_6, %c0_7] : memref<2x128xf32, #tpu.memory_space<vmem>>, vector<1x128xf32>
    %11 = arith.mulf %9, %10 : vector<1x128xf32>
    %12 = math.exp %11 : vector<1x128xf32>
    %13 = tpu.bitcast %8 : vector<1x128xf32> -> vector<1x128xi32>
    %c16_i32 = arith.constant 16 : i32
    %14 = vector.broadcast %c16_i32 : i32 to vector<1x128xi32>
    %15 = arith.shrui %13, %14 : vector<1x128xi32>
    %c1_i32 = arith.constant 1 : i32
    %16 = vector.broadcast %c1_i32 : i32 to vector<1x128xi32>
    %17 = arith.andi %15, %16 : vector<1x128xi32>
    %c32767_i32 = arith.constant 32767 : i32
    %18 = vector.broadcast %c32767_i32 : i32 to vector<1x128xi32>
    %19 = arith.addi %13, %18 : vector<1x128xi32>
    %20 = arith.addi %19, %17 : vector<1x128xi32>
    %c16_i32_8 = arith.constant 16 : i32
    %21 = vector.broadcast %c16_i32_8 : i32 to vector<1x128xi32>
    %22 = arith.shrui %20, %21 : vector<1x128xi32>
    %23 = tpu.bitcast %12 : vector<1x128xf32> -> vector<1x128xi32>
    %c16_i32_9 = arith.constant 16 : i32
    %24 = vector.broadcast %c16_i32_9 : i32 to vector<1x128xi32>
    %25 = arith.shrui %23, %24 : vector<1x128xi32>
    %c1_i32_10 = arith.constant 1 : i32
    %26 = vector.broadcast %c1_i32_10 : i32 to vector<1x128xi32>
    %27 = arith.andi %25, %26 : vector<1x128xi32>
    %c32767_i32_11 = arith.constant 32767 : i32
    %28 = vector.broadcast %c32767_i32_11 : i32 to vector<1x128xi32>
    %29 = arith.addi %23, %28 : vector<1x128xi32>
    %30 = arith.addi %29, %27 : vector<1x128xi32>
    %c16_i32_12 = arith.constant 16 : i32
    %31 = vector.broadcast %c16_i32_12 : i32 to vector<1x128xi32>
    %32 = arith.shrui %30, %31 : vector<1x128xi32>
    %c16_i32_13 = arith.constant 16 : i32
    %33 = vector.broadcast %c16_i32_13 : i32 to vector<1x128xi32>
    %34 = arith.shli %32, %33 : vector<1x128xi32>
    %35 = arith.ori %22, %34 : vector<1x128xi32>
    %c0_14 = arith.constant 0 : index
    %c0_15 = arith.constant 0 : index
    %36 = vector.load %arg4[%c0_14, %c0_15] : memref<1x128xi32, #tpu.memory_space<vmem>>, vector<1x128xi32>
    tpu.vector_store %arg4[%c0_14, %c0_15], %35 {strides = array<i32>} : memref<1x128xi32, #tpu.memory_space<vmem>>, vector<1x128xi32>,
    return
  }
  func.func @transform_0(%arg0: i32) -> (i32, i32) {
    %c0_i32 = arith.constant 0 : i32
    %c0_i32_0 = arith.constant 0 : i32
    return %arg0, %c0_i32 : i32, i32
  }
  func.func @transform_1(%arg0: i32) -> (i32, i32) {
    %c0_i32 = arith.constant 0 : i32
    %c0_i32_0 = arith.constant 0 : i32
    %c0_i32_1 = arith.constant 0 : i32
    return %c0_i32, %c0_i32_0 : i32, i32
  }
  func.func @transform_2(%arg0: i32) -> (i32, i32) {
    %c0_i32 = arith.constant 0 : i32
    %c0_i32_0 = arith.constant 0 : i32
    %c0_i32_1 = arith.constant 0 : i32
    return %c0_i32, %c0_i32_0 : i32, i32
  }
  func.func @transform_3(%arg0: i32) -> (i32, i32) {
    %c0_i32 = arith.constant 0 : i32
    %c0_i32_0 = arith.constant 0 : i32
    return %arg0, %c0_i32 : i32, i32
  }
}

</mosaic_0001>

<bundles_post_ra>
// kernel: tpu_custom_call.1
= control target key start
LH: loop header
LB: loop body
LE: loop exit
PB: predicated region body
PF: predicated region fallthrough
CT: control target
= control target key end

     0   :  { %8 = vsyncpa [#allocation3], 0  ;;  %s250_s0 = inlined_call_operand.hbm [shape: f32[1,128], index: 0, kind: input, shape index: {}]   ;;  %s251_s1 = inlined_call_operand.hbm [shape: f32[2,128], index: 1, kind: input, shape index: {}]   ;;  %s252_s2 = inlined_call_operand.hbm [shape: f32[2,128], index: 2, kind: input, shape index: {}]   ;;  %s253_s3 = inlined_call_operand.hbm [shape: u32[1,128], index: 3, kind: output, shape index: {}]  }
   0x1   :  { %9 = vsyncpa [#allocation6], 0  ;;  %s27_s14 = sshll.u32 %s251_s1, 4  ;;  %s28_s14 = int_to_ptr.hbm [resolvable:$true] %s27_s14 }
   0x2   :  { %10 = vsyncpa [#allocation4], 0  ;;  %s214_s15 = smov [#allocation5]   ;;  %s16_s19 = sshll.u32 %s250_s0, 4  ;;  %s17_s19 = int_to_ptr.hbm [resolvable:$true] %s16_s19 }
   0x3   :  { %s29_s16 = sshll.u32 %s214_s15, 4  ;;  %s215_s20 = smov [#allocation2]   ;;  %s30_s16 = int_to_ptr.vmem [resolvable:$true] %s29_s16 }
   0x4   :  { %32 = dma.hbm_to_vmem [thread:$0]  %s28_s14, 32, %s30_s16, [#allocation6]  }
   0x5   :  { %s18_s21 = sshll.u32 %s215_s20, 4  ;;  %s38_s24 = sshll.u32 %s252_s2, 4  ;;  %s19_s21 = int_to_ptr.vmem [resolvable:$true] %s18_s21  ;;  %s39_s24 = int_to_ptr.hbm [resolvable:$true] %s38_s24 }
   0x6   :  { %21 = dma.hbm_to_vmem [thread:$0]  %s17_s19, 16, %s19_s21, [#allocation3]  }
   0x7   :  { %s216_s1 = smov [#allocation7]  }
   0x8   :  { %s40_s25 = sshll.u32 %s216_s1, 4  ;;  %s41_s25 = int_to_ptr.vmem [resolvable:$true] %s40_s25 }
   0x9   :  { %43 = dma.hbm_to_vmem [thread:$0]  %s39_s24, 32, %s41_s25, [#allocation6]  }
   0xa   :  { %208 = dma.done.wait [#allocation3], 16  }
   0xb   :  { %209 = vsyncadd [#allocation3], 4294967280 }
   0xc   :  { %210 = dma.done.wait [#allocation6], 64  }
   0xd   :  { %211 = vsyncadd [#allocation6], 4294967232  ;;  %v56_v0 = vld [vmem:[#allocation2] sm:$0x1]  ;;  %v57_v1 = vld [vmem:[#allocation5] sm:$0x1] }
   0xe   :  { %v59_v2 = vld [vmem:[#allocation5 + $0x1] sm:$0x1]  ;;  %v58_v3 = vsub.f32 %v56_v0, %v57_v1  ;;  %v62_v5 = vld [vmem:[#allocation7] sm:$0x1]  ;;  %v67_v6 = vld [vmem:[#allocation7 + $0x1] sm:$0x1] }
   0xf   :  { %v60_v4 = vsub.f32 %v56_v0, %v59_v2  ;;  %s217_s0 = smov [#allocation8]   ;;  %s93_s28 = sshll.u32 %s253_s3, 4  ;;  %s94_s28 = int_to_ptr.hbm [resolvable:$true] %s93_s28 }
  0x10   :  { %v61_v7 = vmul.f32 %v58_v3, %v58_v3  ;;  %s91_s2 = sshll.u32 %s217_s0, 4  ;;  %s92_s2 = int_to_ptr.vmem [resolvable:$true] %s91_s2 }
  0x11   :  { %v66_v8 = vmul.f32 %v60_v4, %v60_v4 }
  0x12   :  { %v63_v9 = vmul.f32 %v62_v5, %v61_v7 }
  0x13   :  { %v68_v10 = vmul.f32 %v67_v6, %v66_v8 }
  0x14   :  { %v64_v11 = vmul.f32 1.442695, %v63_v9 }
  0x15   :  { %v69_v12 = vmul.f32 1.442695, %v68_v10 }
  0x16   :  { %108 = vpow2.f32 %v64_v11 }
  0x17   :  { %110 = vpow2.f32 %v69_v12 }
  0x1c   :  { %v109_v13 = vpop.eup %108 }
  0x1d   :  { %v111_v14 = vpop.eup %110  ;;  %v72_v15 = vshrl.u32 %v109_v13, 16  ;;  %v74_v16 = vadd.s32 32767, %v109_v13 }
  0x1e   :  { %v78_v17 = vshrl.u32 %v111_v14, 16  ;;  %v80_v18 = vadd.s32 32767, %v111_v14 }
  0x1f   :  { %v73_v19 = vand.u32 1, %v72_v15 }
  0x20   :  { %v79_v20 = vand.u32 1, %v78_v17 }
  0x21   :  { %v75_v21 = vadd.s32 %v74_v16, %v73_v19 }
  0x22   :  { %v81_v22 = vadd.s32 %v80_v18, %v79_v20 }
  0x23   :  { %v76_v23 = vshrl.u32 %v75_v21, 16 }
  0x24   :  { %v82_v24 = vshrl.u32 %v81_v22, 16 }
  0x26   :  { %v83_v25 = vshll.u32 %v82_v24, 16 }
  0x28   :  { %v84_v26 = vor.u32 %v83_v25, %v76_v23 }
  0x2a   :  { %85 = vst [vmem:[#allocation8] sm:$0x1] %v84_v26 }
  0x2b   :  { %96 = dma.vmem_to_hbm [thread:$0]  %s92_s2, 16, %s94_s28, [#allocation4]  }
  0x2c   :  { %212 = dma.done.wait [#allocation4], 16  }
  0x2d   :  { %213 = vsyncadd [#allocation4], 4294967280 }
  0x2e   :  { %101 = vsyncpa [#allocation3], 1 }
  0x2f   :  { %102 = vsyncpa [#allocation6], 1 }
  0x30   :  { %103 = vsyncpa [#allocation4], 1 }

</bundles_post_ra>
